<compile_context>
chip_gen: v7x
topology: tpu7x:2x2x1
jax: 0.10.0
libtpu: 0.0.40
codegen_flags: <defaults>
</compile_context>

<pallas_src>
import jax
import jax.numpy as jnp
import numpy as np
from jax.experimental import pallas as pl
from jax.experimental.pallas import tpu as pltpu

LEAKY_SLOPE = 0.01  # nn.LeakyReLU() default


# -------------------- Fused kernel --------------------
def prior_fused_kernel(x_ref, wl_ref, bl_ref, m_ref, bc_ref, out_ref):
    # x:  (B, N)   f32   full, resident
    # wl: (N, HW)  f32   full, resident (transposed PyTorch Linear weight)
    # bl: (1, HW)  f32   full, resident (Linear bias)
    # m:  (HW, TN) bf16  column tile of the dense "same"-conv operator
    # bc: (1,)     f32   SMEM scalar (Conv2d bias)
    # out:(B, TN)  f32   lane-dense output tile
    B, N = x_ref.shape
    HW = wl_ref.shape[1]

    x = x_ref[...]          # (B, N)
    wl = wl_ref[...]        # (N, HW)

    # Linear on the VPU: N is tiny, so N broadcast-FMAs beat an almost-empty
    # MXU matmul (skips the MXU push/pop latency entirely).
    # NOTE: recomputed per grid step when grid > 1; with N=4 this is ~1% work.
    y = jnp.broadcast_to(bl_ref[...], (B, HW))
    for n in range(N):                              # static unroll, N small
        y = y + x[:, n:n + 1] * wl[n:n + 1, :]

    y = jnp.where(y >= 0.0, y, LEAKY_SLOPE * y)     # LeakyReLU

    # 5x5 zero-padded "same" conv as ONE MXU matmul against the dense operator
    # tile (bf16 inputs, f32 accumulation).
    z = jnp.dot(y.astype(m_ref.dtype), m_ref[...],
                preferred_element_type=jnp.float32)

    out_ref[...] = jax.nn.sigmoid(z + bc_ref[0])


# -------------------- Host-side (numpy) precompute of the conv operator --------------------
def build_conv_operator_np(wc, H, W, HWp):
    """Dense M (HW, HWp) such that out_flat = y_flat @ M equals a zero-padded
    'same' cross-correlation with kernel wc (PyTorch Conv2d semantics).
    Columns [HW, HWp) are zero padding for lane-dense output tiles."""
    wc = np.asarray(wc, np.float32)
    K = wc.shape[0]
    P = K // 2
    HW = H * W
    M = np.zeros((HW, HWp), np.float32)
    oy, ox = np.meshgrid(np.arange(H), np.arange(W), indexing="ij")
    out_idx = (oy * W + ox).ravel()
    for dy in range(K):
        for dx in range(K):
            iy = oy + dy - P
            ix = ox + dx - P
            valid = ((iy >= 0) & (iy < H) & (ix >= 0) & (ix < W)).ravel()
            in_idx = (np.clip(iy, 0, H - 1) * W + np.clip(ix, 0, W - 1)).ravel()
            np.add.at(M, (in_idx[valid], out_idx[valid]), wc[dy, dx])
    return M


# -------------------- Hardware / tiling helpers --------------------
def _num_tensorcores():
    """Best-effort TensorCore count (2 on v7x, 1 on v5e/v6e). Defaults to 1."""
    try:
        info = pltpu.get_tpu_info()
        for name in ("num_cores", "core_count", "num_tensorcores",
                     "cores_per_chip", "num_cores_per_chip"):
            v = getattr(info, name, None)
            if isinstance(v, int) and v > 0:
                return v
    except Exception:
        pass
    try:
        v = getattr(jax.devices()[0], "num_cores", None)
        if isinstance(v, int) and v > 0:
            return v
    except Exception:
        pass
    return 1


def _pick_tn(HW, HWp, m_itemsize, ncores):
    """Lane-dense output-column tile: multiple of 128 dividing HWp, with the
    double-buffered M tile under a conservative VMEM budget (fits v5e's 16 MiB
    scoped default), split into >=2 tiles only on multi-TensorCore parts."""
    q = HWp // 128
    budget = 12 * 1024 * 1024
    per_col_bytes = 2 * HW * m_itemsize   # double-buffered M bytes per output column
    for require_split in (True, False):
        for d in range(q, 0, -1):         # largest tile first
            if q % d:
                continue
            if 128 * d * per_col_bytes > budget:
                continue
            if require_split and ncores >= 2 and q >= 2 and q // d < 2:
                continue
            return 128 * d
    return 128  # minimum lane-dense tile; wrapper raises vmem_limit_bytes if needed


# -------------------- Forward builder (precomputes M once per weight set) --------------------
def make_prior_forward(wl, bl, wc, bc, image_shape):
    H, W = image_shape
    HW = H * W
    HWp = ((HW + 127) // 128) * 128                     # lane-dense padded width

    # Host-side, once-per-weight-set precompute (hoisted out of the hot path).
    M = jnp.asarray(build_conv_operator_np(wc, H, W, HWp)).astype(jnp.bfloat16)

    wl = jnp.asarray(wl, jnp.float32)                   # (N, HW)
    bl = jnp.asarray(bl, jnp.float32).reshape(1, HW)
    bc = jnp.asarray(bc, jnp.float32).reshape(1)
    N = wl.shape[0]

    ncores = _num_tensorcores()
    tn = _pick_tn(HW, HWp, M.dtype.itemsize, ncores)
    ntiles = HWp // tn

    # Rough VMEM footprint: double-buffered M tile + resident x/wl/bl + output.
    est_vmem = (2 * HW * tn * M.dtype.itemsize
                + N * HW * 4 + HW * 4 + 2 * 8 * tn * 4)
    vmem_limit = None
    if est_vmem > 12 * 1024 * 1024:
        vmem_limit = int(min(est_vmem * 3 // 2, 56 * 1024 * 1024))

    def forward(x):
        B = x.shape[0]
        cost = pl.CostEstimate(
            flops=2 * B * HW * (N + HWp),
            transcendentals=B * HWp,
            bytes_accessed=(HW * HWp * M.dtype.itemsize + N * HW * 4
                            + HW * 4 + B * N * 4 + B * HWp * 4))
        out_flat = pl.pallas_call(
            prior_fused_kernel,
            out_shape=jax.ShapeDtypeStruct((B, HWp), jnp.float32),
            grid=(ntiles,),
            in_specs=[
                pl.BlockSpec((B, N), lambda j: (0, 0)),         # x   (full, resident)
                pl.BlockSpec((N, HW), lambda j: (0, 0)),        # wl  (full, resident)
                pl.BlockSpec((1, HW), lambda j: (0, 0)),        # bl  (full, resident)
                pl.BlockSpec((HW, tn), lambda j: (0, j)),       # M   column tile (bf16)
                pl.BlockSpec(memory_space=pltpu.MemorySpace.SMEM),  # bc scalar
            ],
            out_specs=pl.BlockSpec((B, tn), lambda j: (0, j)),  # lane-dense output
            compiler_params=pltpu.CompilerParams(
                dimension_semantics=("parallel",),
                vmem_limit_bytes=vmem_limit),
            cost_estimate=cost,
        )(x, wl, bl, M, bc)
        # Drop lane padding and restore NCHW like the PyTorch module.
        return out_flat[:, :HW].reshape(B, 1, H, W)

    return jax.jit(forward)


# -------------------- Pure-JAX reference (for correctness check) --------------------
def reference(x, wl, bl, wc, bc, image_shape, kernel_size=5):
    H, W = image_shape
    K = kernel_size
    P = K // 2
    B = x.shape[0]
    y = x @ wl + bl
    y = jnp.where(y >= 0.0, y, LEAKY_SLOPE * y)
    y = y.reshape(B, 1, H, W)
    out = jax.lax.conv_general_dilated(
        y, wc.reshape(1, 1, K, K),
        window_strides=(1, 1), padding=[(P, P), (P, P)],
        dimension_numbers=("NCHW", "OIHW", "NCHW"))
    out = out + bc[0]
    return jax.nn.sigmoid(out)


if __name__ == "__main__":
    # Small shapes consistent with the module:
    B = 2            # batch
    N = 4            # num_scalar_input
    H, W = 16, 16    # image_shape
    K = 5            # final_kernel_size

    key = jax.random.PRNGKey(0)
    kx, kw, kb, kc = jax.random.split(key, 4)

    # Deterministic parameter init (mimics PyTorch uniform(-1/sqrt(fan_in), 1/sqrt(fan_in))).
    lin_bound = 1.0 / np.sqrt(N)
    wl = jax.random.uniform(kw, (N, H * W), jnp.float32, -lin_bound, lin_bound)   # Linear.weight^T
    bl = jax.random.uniform(kb, (1, H * W), jnp.float32, -lin_bound, lin_bound)   # Linear.bias
    conv_bound = 1.0 / np.sqrt(1 * K * K)
    wc = jax.random.uniform(kc, (K, K), jnp.float32, -conv_bound, conv_bound)     # Conv2d.weight[0,0]
    bc = jnp.full((1,), 2.0, jnp.float32)                                         # Conv2d.bias.fill_(2)

    x = jax.random.normal(kx, (B, N), jnp.float32)

    prior_forward = make_prior_forward(wl, bl, wc, bc, (H, W))   # M built once here
    out = jax.block_until_ready(prior_forward(x))

    ref = jax.block_until_ready(reference(x, wl, bl, wc, bc, (H, W), K))
    assert out.shape == (B, 1, H, W)
    # bf16 conv operator -> relaxed tolerance (per perf review).
    np.testing.assert_allclose(np.asarray(out), np.asarray(ref), rtol=1e-2, atol=1e-2)

    print("KERNEL_OK")
</pallas_src>

<mosaic_0001>
module attributes {stable_mosaic.version = 11 : i64} {
  func.func @prior_fused_kernel(%arg0: i32, %arg1: memref<2x4xf32, #tpu.memory_space<vmem>>, %arg2: memref<4x256xf32, #tpu.memory_space<vmem>>, %arg3: memref<1x256xf32, #tpu.memory_space<vmem>>, %arg4: memref<256x256xbf16, #tpu.memory_space<vmem>>, %arg5: memref<1xf32, #tpu.memory_space<smem>>, %arg6: memref<2x256xf32, #tpu.memory_space<vmem>>) attributes {dimension_semantics = [#tpu.dimension_semantics<parallel>], iteration_bounds = array<i64: 1>, scalar_prefetch = 0 : i64, scratch_operands = 0 : i64, tpu.core_type = #tpu.core_type<tc>, window_params = [{pipeline_mode = #tpu.pipeline_mode<synchronous>, transform_indices = @transform_0, window_bounds = array<i64: 2, 4>}, {pipeline_mode = #tpu.pipeline_mode<synchronous>, transform_indices = @transform_1, window_bounds = array<i64: 4, 256>}, {pipeline_mode = #tpu.pipeline_mode<synchronous>, transform_indices = @transform_2, window_bounds = array<i64: 1, 256>}, {transform_indices = @transform_3, window_bounds = array<i64: 256, 256>}, {transform_indices = @transform_4, window_bounds = array<i64: 1>}, {transform_indices = @transform_5, window_bounds = array<i64: 2, 256>}]} {
    %c0 = arith.constant 0 : index
    %c0_0 = arith.constant 0 : index
    %0 = vector.load %arg1[%c0, %c0_0] : memref<2x4xf32, #tpu.memory_space<vmem>>, vector<2x4xf32>
    %c0_1 = arith.constant 0 : index
    %c0_2 = arith.constant 0 : index
    %1 = vector.load %arg2[%c0_1, %c0_2] : memref<4x256xf32, #tpu.memory_space<vmem>>, vector<4x256xf32>
    %c0_3 = arith.constant 0 : index
    %c0_4 = arith.constant 0 : index
    %2 = vector.load %arg3[%c0_3, %c0_4] : memref<1x256xf32, #tpu.memory_space<vmem>>, vector<1x256xf32>
    %3 = vector.shape_cast %2 : vector<1x256xf32> to vector<1x256xf32>
    %4 = vector.broadcast %3 : vector<1x256xf32> to vector<2x256xf32>
    %5 = vector.extract_strided_slice %0 {offsets = [0, 0], sizes = [2, 1], strides = [1, 1]} : vector<2x4xf32> to vector<2x1xf32>
    %6 = vector.extract_strided_slice %1 {offsets = [0, 0], sizes = [1, 256], strides = [1, 1]} : vector<4x256xf32> to vector<1x256xf32>
    %7 = vector.broadcast %5 : vector<2x1xf32> to vector<2x256xf32>
    %8 = vector.broadcast %6 : vector<1x256xf32> to vector<2x256xf32>
    %9 = arith.mulf %7, %8 : vector<2x256xf32>
    %10 = arith.addf %4, %9 : vector<2x256xf32>
    %11 = vector.extract_strided_slice %0 {offsets = [0, 1], sizes = [2, 1], strides = [1, 1]} : vector<2x4xf32> to vector<2x1xf32>
    %12 = vector.extract_strided_slice %1 {offsets = [1, 0], sizes = [1, 256], strides = [1, 1]} : vector<4x256xf32> to vector<1x256xf32>
    %13 = vector.broadcast %11 : vector<2x1xf32> to vector<2x256xf32>
    %14 = vector.broadcast %12 : vector<1x256xf32> to vector<2x256xf32>
    %15 = arith.mulf %13, %14 : vector<2x256xf32>
    %16 = arith.addf %10, %15 : vector<2x256xf32>
    %17 = vector.extract_strided_slice %0 {offsets = [0, 2], sizes = [2, 1], strides = [1, 1]} : vector<2x4xf32> to vector<2x1xf32>
    %18 = vector.extract_strided_slice %1 {offsets = [2, 0], sizes = [1, 256], strides = [1, 1]} : vector<4x256xf32> to vector<1x256xf32>
    %19 = vector.broadcast %17 : vector<2x1xf32> to vector<2x256xf32>
    %20 = vector.broadcast %18 : vector<1x256xf32> to vector<2x256xf32>
    %21 = arith.mulf %19, %20 : vector<2x256xf32>
    %22 = arith.addf %16, %21 : vector<2x256xf32>
    %23 = vector.extract_strided_slice %0 {offsets = [0, 3], sizes = [2, 1], strides = [1, 1]} : vector<2x4xf32> to vector<2x1xf32>
    %24 = vector.extract_strided_slice %1 {offsets = [3, 0], sizes = [1, 256], strides = [1, 1]} : vector<4x256xf32> to vector<1x256xf32>
    %25 = vector.broadcast %23 : vector<2x1xf32> to vector<2x256xf32>
    %26 = vector.broadcast %24 : vector<1x256xf32> to vector<2x256xf32>
    %27 = arith.mulf %25, %26 : vector<2x256xf32>
    %28 = arith.addf %22, %27 : vector<2x256xf32>
    %cst = arith.constant 0.000000e+00 : f32
    %29 = vector.broadcast %cst : f32 to vector<2x256xf32>
    %30 = arith.cmpf oge, %28, %29 : vector<2x256xf32>
    %cst_5 = arith.constant 0.00999999977 : f32
    %31 = vector.broadcast %cst_5 : f32 to vector<2x256xf32>
    %32 = arith.mulf %31, %28 : vector<2x256xf32>
    %33 = arith.select %30, %28, %32 : vector<2x256xi1>, vector<2x256xf32>
    %34 = arith.truncf %33 : vector<2x256xf32> to vector<2x256xbf16>
    %c0_6 = arith.constant 0 : index
    %c0_7 = arith.constant 0 : index
    %35 = vector.load %arg4[%c0_6, %c0_7] : memref<256x256xbf16, #tpu.memory_space<vmem>>, vector<256x256xbf16>
    %cst_8 = arith.constant dense<0.000000e+00> : vector<2x256xf32>
    %36 = tpu.matmul %34, %35, %cst_8 {dimension_numbers = #tpu.dot_dimension_numbers<[1], [0], [0], [1], [0, 0, 1, 1], [], []>} : vector<2x256xbf16>, vector<256x256xbf16>, vector<2x256xf32> -> vector<2x256xf32>
    %c0_9 = arith.constant 0 : index
    %37 = memref.load %arg5[%c0_9] : memref<1xf32, #tpu.memory_space<smem>>
    %38 = vector.broadcast %37 : f32 to vector<2x256xf32>
    %39 = arith.addf %36, %38 : vector<2x256xf32>
    %40 = arith.negf %39 : vector<2x256xf32>
    %41 = math.exp %40 : vector<2x256xf32>
    %cst_10 = arith.constant 1.000000e+00 : f32
    %42 = vector.broadcast %cst_10 : f32 to vector<2x256xf32>
    %43 = arith.addf %42, %41 : vector<2x256xf32>
    %44 = arith.divf %42, %43 : vector<2x256xf32>
    %c0_11 = arith.constant 0 : index
    %c0_12 = arith.constant 0 : index
    %45 = vector.load %arg6[%c0_11, %c0_12] : memref<2x256xf32, #tpu.memory_space<vmem>>, vector<2x256xf32>
    tpu.vector_store %arg6[%c0_11, %c0_12], %44 {strides = array<i32>} : memref<2x256xf32, #tpu.memory_space<vmem>>, vector<2x256xf32>,
    return
  }
  func.func @transform_0(%arg0: i32) -> (i32, i32) {
    %c0_i32 = arith.constant 0 : i32
    %c0_i32_0 = arith.constant 0 : i32
    %c0_i32_1 = arith.constant 0 : i32
    return %c0_i32, %c0_i32_0 : i32, i32
  }
  func.func @transform_1(%arg0: i32) -> (i32, i32) {
    %c0_i32 = arith.constant 0 : i32
    %c0_i32_0 = arith.constant 0 : i32
    %c0_i32_1 = arith.constant 0 : i32
    return %c0_i32, %c0_i32_0 : i32, i32
  }
  func.func @transform_2(%arg0: i32) -> (i32, i32) {
    %c0_i32 = arith.constant 0 : i32
    %c0_i32_0 = arith.constant 0 : i32
    %c0_i32_1 = arith.constant 0 : i32
    return %c0_i32, %c0_i32_0 : i32, i32
  }
  func.func @transform_3(%arg0: i32) -> (i32, i32) {
    %c0_i32 = arith.constant 0 : i32
    %c0_i32_0 = arith.constant 0 : i32
    return %c0_i32, %arg0 : i32, i32
  }
  func.func @transform_4(%arg0: i32) -> i32 {
    %c0_i32 = arith.constant 0 : i32
    %c0_i32_0 = arith.constant 0 : i32
    return %c0_i32 : i32
  }
  func.func @transform_5(%arg0: i32) -> (i32, i32) {
    %c0_i32 = arith.constant 0 : i32
    %c0_i32_0 = arith.constant 0 : i32
    return %c0_i32, %arg0 : i32, i32
  }
}

</mosaic_0001>

<bundles_post_ra>
// kernel: forward.1
= control target key start
LH: loop header
LB: loop body
LE: loop exit
PB: predicated region body
PF: predicated region fallthrough
CT: control target
= control target key end

     0   :  { %v512_v0 = vmov 0   ;;  %v513_v2 = vmov 2   ;;  %v514_v7 = vmov 1   ;;  %v515_v8 = vmov 3   ;;  %s657_s0 = inlined_call_operand.vmem [shape: f32[2,4], index: 0, kind: input, shape index: {}]   ;;  %s658_s3 = inlined_call_operand.vmem [shape: bf16[256,256], index: 3, kind: input, shape index: {}]   ;;  %s659_s1 = inlined_call_operand.vmem [shape: f32[4,256], index: 1, kind: input, shape index: {}]   ;;  %s660_s2 = inlined_call_operand.vmem [shape: f32[1,256], index: 2, kind: input, shape index: {}]   ;;  %s661_s4 = inlined_call_operand.<no memory space> [shape: f32[1], index: 4, kind: input, shape index: {}]   ;;  %s662_s5 = inlined_call_operand.vmem [shape: f32[2,256], index: 5, kind: output, shape index: {}]  }
   0x1   :  { %451 = vset.pattern.permute.xlu0 %v512_v0  ;;  %v21_v1 = vld [vmem:[%s657_s0] sm:$0x3]  ;;  %453 = vset.pattern.permute.xlu1 %v513_v2  ;;  %v456_v3 = vld [vmem:[%s658_s3 + $0x4] ss:$8 sps:$4 sm:$0xff]   ;;  %v459_v5 = vld [vmem:[%s658_s3 + $0x14] ss:$8 sps:$4 sm:$0xff]   ;;  %v25_v37 = vlaneseq }
   0x2   :  { %37 = vperm.xlu0 %451, %v21_v1   ;;  %90 = vperm.xlu1 %453, %v21_v1   ;;  %v458_v4 = vld [vmem:[%s658_s3] ss:$8 sps:$4 sm:$0xff]   ;;  %v461_v6 = vld [vmem:[%s658_s3 + $0x10] ss:$8 sps:$4 sm:$0xff]   ;;  %v462_v9 = vld [vmem:[%s658_s3 + $0x24] ss:$8 sps:$4 sm:$0xff]  }
   0x3   :  { %343 = vmatprep.subr.bf16.mxu0 %v456_v3  ;;  %v464_v10 = vld [vmem:[%s658_s3 + $0x20] ss:$8 sps:$4 sm:$0xff]   ;;  %v465_v11 = vld [vmem:[%s658_s3 + $0x34] ss:$8 sps:$4 sm:$0xff]   ;;  %v467_v12 = vld [vmem:[%s658_s3 + $0x30] ss:$8 sps:$4 sm:$0xff]  }
   0x4   :  { %344 = vmatpush1.bf16.msra.mxu0 %v458_v4  ;;  %v468_v13 = vld [vmem:[%s658_s3 + $0x44] ss:$8 sps:$4 sm:$0xff]   ;;  %v470_v14 = vld [vmem:[%s658_s3 + $0x40] ss:$8 sps:$4 sm:$0xff]   ;;  %v471_v15 = vld [vmem:[%s658_s3 + $0x54] ss:$8 sps:$4 sm:$0xff]  }
   0x5   :  { %345 = vmatprep.subr.bf16.mxu0 %v459_v5  ;;  %v473_v16 = vld [vmem:[%s658_s3 + $0x50] ss:$8 sps:$4 sm:$0xff]   ;;  %v474_v17 = vld [vmem:[%s658_s3 + $0x64] ss:$8 sps:$4 sm:$0xff]   ;;  %v476_v18 = vld [vmem:[%s658_s3 + $0x60] ss:$8 sps:$4 sm:$0xff]  }
   0x6   :  { %452 = vset.pattern.permute.xlu0 %v514_v7  ;;  %454 = vset.pattern.permute.xlu1 %v515_v8  ;;  %v477_v19 = vld [vmem:[%s658_s3 + $0x74] ss:$8 sps:$4 sm:$0xff]   ;;  %v479_v20 = vld [vmem:[%s658_s3 + $0x70] ss:$8 sps:$4 sm:$0xff]   ;;  %v480_v21 = vld [vmem:[%s658_s3 + $0x84] ss:$8 sps:$4 sm:$0xff]  }
   0x7   :  { %64 = vperm.xlu0 %452, %v21_v1   ;;  %116 = vperm.xlu1 %454, %v21_v1   ;;  %v482_v22 = vld [vmem:[%s658_s3 + $0x80] ss:$8 sps:$4 sm:$0xff]   ;;  %v483_v23 = vld [vmem:[%s658_s3 + $0x94] ss:$8 sps:$4 sm:$0xff]   ;;  %v485_v24 = vld [vmem:[%s658_s3 + $0x90] ss:$8 sps:$4 sm:$0xff]  }
   0x8   :  { %346 = vmatpush1.bf16.msra.mxu0 %v461_v6  ;;  %v486_v25 = vld [vmem:[%s658_s3 + $0xa4] ss:$8 sps:$4 sm:$0xff]   ;;  %v488_v26 = vld [vmem:[%s658_s3 + $0xa0] ss:$8 sps:$4 sm:$0xff]   ;;  %v489_v27 = vld [vmem:[%s658_s3 + $0xb4] ss:$8 sps:$4 sm:$0xff]  }
   0x9   :  { %347 = vmatprep.subr.bf16.mxu0 %v462_v9  ;;  %v491_v28 = vld [vmem:[%s658_s3 + $0xb0] ss:$8 sps:$4 sm:$0xff]   ;;  %v492_v29 = vld [vmem:[%s658_s3 + $0xc4] ss:$8 sps:$4 sm:$0xff]   ;;  %v494_v30 = vld [vmem:[%s658_s3 + $0xc0] ss:$8 sps:$4 sm:$0xff]  }
   0xa   :  { %v495_v31 = vld [vmem:[%s658_s3 + $0xd4] ss:$8 sps:$4 sm:$0xff]   ;;  %v497_v32 = vld [vmem:[%s658_s3 + $0xd0] ss:$8 sps:$4 sm:$0xff]   ;;  %v498_v33 = vld [vmem:[%s658_s3 + $0xe4] ss:$8 sps:$4 sm:$0xff]  }
   0xb   :  { %455 = vset.pattern.permute.xlu0 %v515_v8  ;;  %v500_v34 = vld [vmem:[%s658_s3 + $0xe0] ss:$8 sps:$4 sm:$0xff]   ;;  %v501_v35 = vld [vmem:[%s658_s3 + $0xf4] ss:$8 sps:$4 sm:$0xff]   ;;  %v503_v36 = vld [vmem:[%s658_s3 + $0xf0] ss:$8 sps:$4 sm:$0xff]  }
   0xc   :  { %348 = vmatpush1.bf16.msra.mxu0 %v464_v10  ;;  %v26_v38 = vshrl.u32 %v25_v37, 7  ;;  %v22_v41 = vld [vmem:[%s659_s1] sm:$0xff] }
   0xd   :  { %349 = vmatprep.subr.bf16.mxu0 %v465_v11  ;;  %v23_v50 = vld [vmem:[%s660_s2] sm:$0x3] }
   0xe   :  { %v27_v39 = vsub.s32 0, %v26_v38  ;;  %v47_v40 = vsub.s32 4, %v26_v38  ;;  %v31_v42 = vsub.s32 1, %v26_v38  ;;  %v73_v45 = vsub.s32 5, %v26_v38 }
   0xf   :  { %v95_v46 = vsub.s32 2, %v26_v38  ;;  %v99_v47 = vsub.s32 6, %v26_v38  ;;  %v121_v48 = vsub.s32 3, %v26_v38  ;;  %v125_v49 = vsub.s32 7, %v26_v38 }
  0x10   :  { %350 = vmatpush1.bf16.msra.mxu0 %v467_v12  ;;  %v44_v43 = vrot.slane %v22_v41, %v27_v39  ;;  %v48_v44 = vrot.slane %v22_v41, %v47_v40  ;;  %v70_v53 = vrot.slane %v22_v41, %v31_v42  ;;  %v74_v54 = vrot.slane %v22_v41, %v73_v45 }
  0x11   :  { %351 = vmatprep.subr.bf16.mxu0 %v468_v13  ;;  %v96_v55 = vrot.slane %v22_v41, %v95_v46  ;;  %v100_v56 = vrot.slane %v22_v41, %v99_v47  ;;  %v122_v59 = vrot.slane %v22_v41, %v121_v48  ;;  %v126_v60 = vrot.slane %v22_v41, %v125_v49 }
  0x12   :  { %v54_v51 = vrot.slane %v44_v43, %v27_v39  ;;  %v58_v52 = vrot.slane %v48_v44, %v27_v39  ;;  %v28_v61 = vrot.slane %v23_v50, %v27_v39  ;;  %v32_v62 = vrot.slane %v23_v50, %v31_v42 }
  0x13   :  { %v80_v1 = vrot.slane %v70_v53, %v31_v42  ;;  %v84_v2 = vrot.slane %v74_v54, %v31_v42  ;;  %v106_v3 = vrot.slane %v96_v55, %v95_v46  ;;  %v110_v4 = vrot.slane %v100_v56, %v95_v46 }
  0x14   :  { %352 = vmatpush1.bf16.msra.mxu0 %v470_v14  ;;  %v132_v5 = vrot.slane %v122_v59, %v121_v48  ;;  %v136_v6 = vrot.slane %v126_v60, %v121_v48 }
  0x15   :  { %353 = vmatprep.subr.bf16.mxu0 %v471_v15 }
  0x18   :  { %354 = vmatpush1.bf16.msra.mxu0 %v473_v16 }
  0x19   :  { %355 = vmatprep.subr.bf16.mxu0 %v474_v17 }
  0x1c   :  { %356 = vmatpush1.bf16.msra.mxu0 %v476_v18 }
  0x1d   :  { %357 = vmatprep.subr.bf16.mxu0 %v477_v19 }
  0x20   :  { %358 = vmatpush1.bf16.msra.mxu0 %v479_v20 }
  0x21   :  { %359 = vmatprep.subr.bf16.mxu0 %v480_v21 }
  0x24   :  { %360 = vmatpush1.bf16.msra.mxu0 %v482_v22 }
  0x25   :  { %361 = vmatprep.subr.bf16.mxu0 %v483_v23 }
  0x28   :  { %362 = vmatpush1.bf16.msra.mxu0 %v485_v24 }
  0x29   :  { %363 = vmatprep.subr.bf16.mxu0 %v486_v25 }
  0x2c   :  { %364 = vmatpush1.bf16.msra.mxu0 %v488_v26 }
  0x2d   :  { %365 = vmatprep.subr.bf16.mxu0 %v489_v27 }
  0x30   :  { %366 = vmatpush1.bf16.msra.mxu0 %v491_v28 }
  0x31   :  { %367 = vmatprep.subr.bf16.mxu0 %v492_v29  ;;  %v182_v29 = vstv %s661_s4 }
  0x34   :  { %368 = vmatpush1.bf16.msra.mxu0 %v494_v30 }
  0x35   :  { %369 = vmatprep.subr.bf16.mxu0 %v495_v31 }
  0x38   :  { %370 = vmatpush1.bf16.msra.mxu0 %v497_v32 }
  0x39   :  { %371 = vmatprep.subr.bf16.mxu0 %v498_v33 }
  0x3c   :  { %372 = vmatpush1.bf16.msra.mxu0 %v500_v34 }
  0x3d   :  { %373 = vmatprep.subr.bf16.mxu0 %v501_v35 }
  0x40   :  { %374 = vmatpush1.bf16.msra.mxu0 %v503_v36 }
  0x81   :  { %v38_v57 = vpop.permute.xlu0 %37  ;;  %v91_v58 = vpop.permute.xlu1 %90 }
  0x82   :  { %v59_v63 = vmul.f32 %v54_v51, %v38_v57  ;;  %v60_v0 = vmul.f32 %v58_v52, %v38_v57  ;;  %v111_v13 = vmul.f32 %v106_v3, %v91_v58  ;;  %v112_v14 = vmul.f32 %v110_v4, %v91_v58 }
  0x84   :  { %v61_v9 = vadd.f32 %v59_v63, %v28_v61  ;;  %v62_v10 = vadd.f32 %v60_v0, %v32_v62 }
  0x86   :  { %v65_v7 = vpop.permute.xlu0 %64  ;;  %v117_v8 = vpop.permute.xlu1 %116 }
  0x87   :  { %v85_v11 = vmul.f32 %v80_v1, %v65_v7  ;;  %v86_v12 = vmul.f32 %v84_v2, %v65_v7  ;;  %v137_v17 = vmul.f32 %v132_v5, %v117_v8  ;;  %v138_v18 = vmul.f32 %v136_v6, %v117_v8 }
  0x89   :  { %v87_v15 = vadd.f32 %v85_v11, %v61_v9  ;;  %v88_v16 = vadd.f32 %v86_v12, %v62_v10 }
  0x8b   :  { %v113_v19 = vadd.f32 %v111_v13, %v87_v15  ;;  %v114_v20 = vadd.f32 %v112_v14, %v88_v16 }
  0x8d   :  { %v139_v21 = vadd.f32 %v137_v17, %v113_v19  ;;  %v140_v22 = vadd.f32 %v138_v18, %v114_v20 }
  0x8f   :  { %v143_v23 = vmul.f32 0.01, %v139_v21  ;;  %vm142_vm0 = vcmp.ge.f32.partialorder %v140_v22, 0.0  ;;  %v144_v24 = vmul.f32 0.01, %v140_v22  ;;  %vm141_vm1 = vcmp.ge.f32.partialorder %v139_v21, 0.0 }
  0x91   :  { %v146_v25 = vsel %vm142_vm0, %v140_v22, %v144_v24  ;;  %v145_v26 = vsel %vm141_vm1, %v139_v21, %v143_v23 }
  0x92   :  { %v148_v27 = vpack.c.bf16 %v146_v25, %v146_v25  ;;  %v147_v28 = vpack.c.bf16 %v145_v26, %v145_v26 }
  0x94   :  { %375 = vmatprep.mubr.bf16.mxu0 %v148_v27 }
  0x95   :  { %376 = vmatmul.mubr.bf16.vlgmr.msra.gmra.mrb[0].mxu0 %v147_v28 }
 0x168   :  { %v377_v30 = vpop.f32.mrb[0].mxu0 }
 0x169   :  { %v378_v31 = vadd.f32 %v377_v30, %v182_v29  ;;  %v379_v32 = vpop.f32.mrb[1].mxu0 }
 0x16a   :  { %v380_v33 = vadd.f32 %v379_v32, %v182_v29  ;;  %v381_v34 = vpop.f32.mrb[2].mxu0 }
 0x16b   :  { %v444_v35 = vmul.f32 -1.442695, %v378_v31  ;;  %v382_v36 = vpop.f32.mrb[3].mxu0 }
 0x16c   :  { %v445_v37 = vmul.f32 -1.442695, %v380_v33 }
 0x16d   :  { %504 = vpow2.f32 %v444_v35 }
 0x16e   :  { %506 = vpow2.f32 %v445_v37 }
 0x177   :  { %v505_v38 = vpop.eup %504 }
 0x178   :  { %v507_v39 = vpop.eup %506  ;;  %v390_v40 = vadd.f32 1.0, %v505_v38 }
 0x179   :  { %v391_v41 = vadd.f32 1.0, %v507_v39 }
 0x17a   :  { %508 = vrcp.f32 %v390_v40 }
 0x17b   :  { %510 = vrcp.f32 %v391_v41 }
 0x184   :  { %v509_v42 = vpop.eup %508 }
 0x185   :  { %v511_v43 = vpop.eup %510 }
 0x186   :  { %v398_v44 = vcombine.low %v509_v42, %v511_v43 }
 0x188   :  { %446 = vst.sshfl [vmem:[%s662_s5] sm:$0x33 pattern:$0x76325410] %v398_v44 }

</bundles_post_ra>
